<compile_context>
chip_gen: v7x
topology: tpu7x:2x2x1
jax: 0.10.0
libtpu: 0.0.40
codegen_flags: <defaults>
</compile_context>

<pallas_src>
import functools

import jax
import jax.numpy as jnp
from jax.experimental import pallas as pl
from jax.experimental.pallas import tpu as pltpu


def _round_up(x, m):
    return ((x + m - 1) // m) * m


def _pick_batch_tile(B, K, d_key, itemsize,
                     target_block_bytes=4 << 20, min_steps=4):
    """Batch tile from a VMEM byte budget; multiple of 8; >= min_steps grid
    steps when the batch is large enough (pipelining + v7x megacore)."""
    bytes_per_row = max(1, K * d_key * itemsize)
    tb = max(8, (target_block_bytes // bytes_per_row) // 8 * 8)
    if B >= min_steps * 8:
        tb = min(tb, max(8, (B // min_steps) // 8 * 8))
    tb = min(tb, _round_up(B, 8))
    return int(tb)


def _attn_pool_kernel(ek_ref, eq_ref, mask_ref,
                      wk_ref, bk_ref, wq_ref, wo_ref,
                      out_ref, *, batch_size):
    TB, K, d_key = ek_ref.shape
    d_attn_p = wk_ref.shape[1]

    # Upcast once: e_key may arrive as bf16 (halved HBM traffic) but every
    # VPU/EUP op and the MXU accumulation stay f32 (v5e has no bf16 VPU/EUP).
    ek = ek_ref[...].astype(jnp.float32)                     # (TB, K, d_key)
    ek2 = ek.reshape(TB * K, d_key)                          # layout no-op when K % 8 == 0

    # key_tmp = e_key @ Wk^T + b_k   (Wk^T pre-transposed + d_attn-padded on host)
    key_tmp = jnp.dot(ek2, wk_ref[...],
                      preferred_element_type=jnp.float32) + bk_ref[...]   # (TB*K, d_attn_p)
    # query_tmp = e_query @ Wq^T
    query_tmp = jnp.dot(eq_ref[...].astype(jnp.float32), wq_ref[...],
                        preferred_element_type=jnp.float32)               # (TB, d_attn_p)

    tmp2 = jnp.tanh(key_tmp.reshape(TB, K, d_attn_p) + query_tmp[:, None, :])

    # attn score, lane-dense (TB, K); zero-padded d_attn columns contribute 0.
    attn = jnp.sum(tmp2 * wo_ref[...].reshape(1, 1, d_attn_p), axis=-1)   # (TB, K)

    # Validity = user mask AND in-bounds batch row (ragged last grid block:
    # grid*TB may exceed B and the trailing rows hold unspecified data).
    rows = jax.lax.broadcasted_iota(jnp.int32, (TB, K), 0) + pl.program_id(0) * TB
    valid = (mask_ref[...] > 0) & (rows < batch_size)

    # Matches the PyTorch forward (exp without max-subtraction, den==0 guard).
    # jnp.where also keeps inf/NaN from garbage out-of-bounds rows contained.
    attn_exp = jnp.where(valid, jnp.exp(attn), 0.0)                       # (TB, K)
    den = jnp.sum(attn_exp, axis=-1, keepdims=True)                       # (TB, 1)
    den = den + (den == 0).astype(jnp.float32)
    attn_softmax = attn_exp / den                                         # (TB, K)

    # e_attn = sum_k softmax * e_key.  Small K: VPU multiply + sublane reduce
    # (an M=1, depth-K MXU push per batch row is pure fill/drain overhead).
    if K >= 128:
        pooled = jnp.einsum('bk,bkd->bd', attn_softmax, ek,
                            preferred_element_type=jnp.float32)           # (TB, d_key)
    else:
        pooled = jnp.sum(attn_softmax[:, :, None] * ek, axis=1)           # (TB, d_key)

    out_ref[...] = pooled.astype(out_ref.dtype)


def attn_pool(e_key, e_query, w_key, b_key, w_query, w_outer,
              mask_key=None, *, batch_tile=None, use_bf16_ekey=False,
              target_block_bytes=4 << 20):
    """
    e_key:   (B, K, d_key)
    e_query: (B, d_query)
    w_key:   (d_attn, d_key),  b_key: (d_attn,)
    w_query: (d_attn, d_query)
    w_outer: (1, d_attn)
    mask_key: optional (B, K)
    returns: (B, d_key) float32
    """
    B, K, d_key = e_key.shape
    d_query = e_query.shape[1]
    d_attn = w_key.shape[0]

    in_dtype = jnp.bfloat16 if use_bf16_ekey else jnp.float32
    e_key = e_key.astype(in_dtype)
    e_query = e_query.astype(jnp.float32)
    mask2 = (jnp.ones((B, K), dtype=jnp.float32) if mask_key is None
             else mask_key.astype(jnp.float32))

    # --- batch tile from a VMEM byte budget; no host-side padding of e_key ---
    if batch_tile is not None:
        TB = max(8, (int(batch_tile) // 8) * 8)
        TB = min(TB, _round_up(B, 8))
    else:
        TB = _pick_batch_tile(B, K, d_key, jnp.dtype(in_dtype).itemsize,
                              target_block_bytes=target_block_bytes)
    grid = (pl.cdiv(B, TB),)

    # --- host weight prep: transpose once, zero-pad d_attn to full 128 lanes --
    d_attn_p = _round_up(d_attn, 128)
    pad_a = d_attn_p - d_attn
    wk_t = jnp.pad(jnp.asarray(w_key, jnp.float32).T, ((0, 0), (0, pad_a)))     # (d_key, d_attn_p)
    wq_t = jnp.pad(jnp.asarray(w_query, jnp.float32).T, ((0, 0), (0, pad_a)))   # (d_query, d_attn_p)
    bk2 = jnp.pad(jnp.asarray(b_key, jnp.float32).reshape(1, d_attn),
                  ((0, 0), (0, pad_a)))                                          # (1, d_attn_p)
    wo2 = jnp.pad(jnp.asarray(w_outer, jnp.float32).reshape(1, d_attn),
                  ((0, 0), (0, pad_a)))                                          # (1, d_attn_p)

    kernel = functools.partial(_attn_pool_kernel, batch_size=B)

    return pl.pallas_call(
        kernel,
        out_shape=jax.ShapeDtypeStruct((B, d_key), jnp.float32),
        grid_spec=pltpu.PrefetchScalarGridSpec(
            num_scalar_prefetch=0,
            grid=grid,
            in_specs=[
                pl.BlockSpec((TB, K, d_key), lambda b: (b, 0, 0)),   # e_key (dominant stream)
                pl.BlockSpec((TB, d_query), lambda b: (b, 0)),       # e_query
                pl.BlockSpec((TB, K), lambda b: (b, 0)),             # mask (lane-dense)
                # loop-invariant weights: constant block index -> fetched once.
                pl.BlockSpec((d_key, d_attn_p), lambda b: (0, 0)),   # W_k^T (padded)
                pl.BlockSpec((1, d_attn_p), lambda b: (0, 0)),       # b_k   (padded)
                pl.BlockSpec((d_query, d_attn_p), lambda b: (0, 0)), # W_q^T (padded)
                pl.BlockSpec((1, d_attn_p), lambda b: (0, 0)),       # w_o   (padded)
            ],
            out_specs=pl.BlockSpec((TB, d_key), lambda b: (b, 0)),
        ),
        compiler_params=pltpu.CompilerParams(
            dimension_semantics=("parallel",),      # batch axis -> megacore on v7x
            vmem_limit_bytes=32 << 20,              # safe on v7x (64 MiB) and raises v5e's 16 MiB default
        ),
    )(e_key, e_query, mask2, wk_t, bk2, wq_t, wo2)


def attn_pool_ref(e_key, e_query, w_key, b_key, w_query, w_outer, mask_key=None):
    # Pure-JAX reference mirroring the PyTorch forward.
    key_tmp = jnp.einsum('bkd,ad->bka', e_key, w_key) + b_key
    query_tmp = jnp.einsum('bq,aq->ba', e_query, w_query)
    tmp2 = jnp.tanh(key_tmp + query_tmp[:, None, :])
    attn = jnp.einsum('bka,oa->bk', tmp2, w_outer)
    attn_exp = jnp.exp(attn)
    if mask_key is not None:
        attn_exp = attn_exp * (mask_key > 0).astype(attn.dtype)
    den = jnp.sum(attn_exp, axis=1)
    den = den + (den == 0).astype(den.dtype)
    attn_softmax = attn_exp / den[:, None]
    return jnp.sum(e_key * attn_softmax[:, :, None], axis=1)


if __name__ == "__main__":
    # Small, VMEM-friendly shapes consistent with the module's forward.
    B, K, d_key, d_query, d_attn = 32, 8, 128, 32, 64

    key = jax.random.PRNGKey(0)
    ks = jax.random.split(key, 7)
    e_key = jax.random.normal(ks[0], (B, K, d_key), dtype=jnp.float32)
    e_query = jax.random.normal(ks[1], (B, d_query), dtype=jnp.float32)
    mask_key = (jax.random.uniform(ks[2], (B, K)) > 0.2).astype(jnp.float32)

    # Deterministic parameters (torch.nn.Linear shapes).
    w_key = 0.1 * jax.random.normal(ks[3], (d_attn, d_key), dtype=jnp.float32)
    b_key = 0.1 * jax.random.normal(ks[4], (d_attn,), dtype=jnp.float32)
    w_query = 0.1 * jax.random.normal(ks[5], (d_attn, d_query), dtype=jnp.float32)
    w_outer = 0.1 * jax.random.normal(ks[6], (1, d_attn), dtype=jnp.float32)

    # 1) Default VMEM-budgeted tiling: B=32 -> TB=8, 4 pipelined grid steps.
    out = jax.block_until_ready(
        attn_pool(e_key, e_query, w_key, b_key, w_query, w_outer, mask_key))
    ref = attn_pool_ref(e_key, e_query, w_key, b_key, w_query, w_outer, mask_key)
    assert out.shape == (B, d_key)
    assert jnp.allclose(out, ref, atol=1e-5, rtol=1e-5), "mismatch vs reference"

    # 2) Ragged batch (B=27, TB=8 -> 4 steps, last block partially OOB), no mask.
    Br = 27
    out_r = jax.block_until_ready(
        attn_pool(e_key[:Br], e_query[:Br], w_key, b_key, w_query, w_outer,
                  batch_tile=8))
    ref_r = attn_pool_ref(e_key[:Br], e_query[:Br], w_key, b_key, w_query, w_outer)
    assert out_r.shape == (Br, d_key)
    assert jnp.allclose(out_r, ref_r, atol=1e-5, rtol=1e-5), "mismatch (ragged)"

    # 3) bf16 e_key feed (halves HBM bytes of the dominant tensor); loose tol.
    out_bf = jax.block_until_ready(
        attn_pool(e_key, e_query, w_key, b_key, w_query, w_outer, mask_key,
                  use_bf16_ekey=True))
    assert jnp.allclose(out_bf, ref, atol=5e-2, rtol=5e-2), "mismatch (bf16 path)"

    print("KERNEL_OK")
</pallas_src>

<mosaic_0001>
module attributes {stable_mosaic.version = 11 : i64} {
  func.func @_attn_pool_kernel(%arg0: i32, %arg1: memref<8x8x128xf32, #tpu.memory_space<vmem>>, %arg2: memref<8x32xf32, #tpu.memory_space<vmem>>, %arg3: memref<8x8xf32, #tpu.memory_space<vmem>>, %arg4: memref<128x128xf32, #tpu.memory_space<vmem>>, %arg5: memref<1x128xf32, #tpu.memory_space<vmem>>, %arg6: memref<32x128xf32, #tpu.memory_space<vmem>>, %arg7: memref<1x128xf32, #tpu.memory_space<vmem>>, %arg8: memref<8x128xf32, #tpu.memory_space<vmem>>) attributes {dimension_semantics = [#tpu.dimension_semantics<parallel>], iteration_bounds = array<i64: 4>, scalar_prefetch = 0 : i64, scratch_operands = 0 : i64, tpu.core_type = #tpu.core_type<tc>, window_params = [{transform_indices = @transform_0, window_bounds = array<i64: 8, 8, 128>}, {transform_indices = @transform_1, window_bounds = array<i64: 8, 32>}, {transform_indices = @transform_2, window_bounds = array<i64: 8, 8>}, {pipeline_mode = #tpu.pipeline_mode<synchronous>, transform_indices = @transform_3, window_bounds = array<i64: 128, 128>}, {pipeline_mode = #tpu.pipeline_mode<synchronous>, transform_indices = @transform_4, window_bounds = array<i64: 1, 128>}, {pipeline_mode = #tpu.pipeline_mode<synchronous>, transform_indices = @transform_5, window_bounds = array<i64: 32, 128>}, {pipeline_mode = #tpu.pipeline_mode<synchronous>, transform_indices = @transform_6, window_bounds = array<i64: 1, 128>}, {transform_indices = @transform_7, window_bounds = array<i64: 8, 128>}]} {
    %c0 = arith.constant 0 : index
    %c0_0 = arith.constant 0 : index
    %c0_1 = arith.constant 0 : index
    %0 = vector.load %arg1[%c0, %c0_0, %c0_1] : memref<8x8x128xf32, #tpu.memory_space<vmem>>, vector<8x8x128xf32>
    %1 = vector.shape_cast %0 : vector<8x8x128xf32> to vector<64x128xf32>
    %c0_2 = arith.constant 0 : index
    %c0_3 = arith.constant 0 : index
    %2 = vector.load %arg4[%c0_2, %c0_3] : memref<128x128xf32, #tpu.memory_space<vmem>>, vector<128x128xf32>
    %cst = arith.constant dense<0.000000e+00> : vector<64x128xf32>
    %3 = tpu.matmul %1, %2, %cst {dimension_numbers = #tpu.dot_dimension_numbers<[1], [0], [0], [1], [0, 0, 1, 1], [], []>} : vector<64x128xf32>, vector<128x128xf32>, vector<64x128xf32> -> vector<64x128xf32>
    %c0_4 = arith.constant 0 : index
    %c0_5 = arith.constant 0 : index
    %4 = vector.load %arg5[%c0_4, %c0_5] : memref<1x128xf32, #tpu.memory_space<vmem>>, vector<1x128xf32>
    %5 = vector.broadcast %4 : vector<1x128xf32> to vector<64x128xf32>
    %6 = arith.addf %3, %5 : vector<64x128xf32>
    %c0_6 = arith.constant 0 : index
    %c0_7 = arith.constant 0 : index
    %7 = vector.load %arg2[%c0_6, %c0_7] : memref<8x32xf32, #tpu.memory_space<vmem>>, vector<8x32xf32>
    %c0_8 = arith.constant 0 : index
    %c0_9 = arith.constant 0 : index
    %8 = vector.load %arg6[%c0_8, %c0_9] : memref<32x128xf32, #tpu.memory_space<vmem>>, vector<32x128xf32>
    %cst_10 = arith.constant dense<0.000000e+00> : vector<8x128xf32>
    %9 = tpu.matmul %7, %8, %cst_10 {dimension_numbers = #tpu.dot_dimension_numbers<[1], [0], [0], [1], [0, 0, 1, 1], [], []>} : vector<8x32xf32>, vector<32x128xf32>, vector<8x128xf32> -> vector<8x128xf32>
    %10 = vector.shape_cast %6 : vector<64x128xf32> to vector<8x8x128xf32>
    %11 = vector.shape_cast %9 : vector<8x128xf32> to vector<8x1x128xf32>
    %12 = vector.broadcast %11 : vector<8x1x128xf32> to vector<8x8x128xf32>
    %13 = arith.addf %10, %12 : vector<8x8x128xf32>
    %14 = math.tanh %13 : vector<8x8x128xf32>
    %c0_11 = arith.constant 0 : index
    %c0_12 = arith.constant 0 : index
    %15 = vector.load %arg7[%c0_11, %c0_12] : memref<1x128xf32, #tpu.memory_space<vmem>>, vector<1x128xf32>
    %16 = vector.shape_cast %15 : vector<1x128xf32> to vector<1x1x128xf32>
    %17 = vector.broadcast %16 : vector<1x1x128xf32> to vector<8x8x128xf32>
    %18 = arith.mulf %14, %17 : vector<8x8x128xf32>
    %cst_13 = arith.constant dense<0.000000e+00> : vector<8x8xf32>
    %19 = vector.multi_reduction <add>, %18, %cst_13 [2] : vector<8x8x128xf32> to vector<8x8xf32>
    %20 = tpu.iota {dimensions = array<i32: 0>} : vector<8x8xi32>
    %c8_i32 = arith.constant 8 : i32
    %21 = arith.muli %arg0, %c8_i32 : i32
    %22 = vector.broadcast %21 : i32 to vector<8x8xi32>
    %23 = arith.addi %20, %22 : vector<8x8xi32>
    %c0_14 = arith.constant 0 : index
    %c0_15 = arith.constant 0 : index
    %24 = vector.load %arg3[%c0_14, %c0_15] : memref<8x8xf32, #tpu.memory_space<vmem>>, vector<8x8xf32>
    %cst_16 = arith.constant 0.000000e+00 : f32
    %25 = vector.broadcast %cst_16 : f32 to vector<8x8xf32>
    %26 = arith.cmpf ogt, %24, %25 : vector<8x8xf32>
    %c32_i32 = arith.constant 32 : i32
    %27 = vector.broadcast %c32_i32 : i32 to vector<8x8xi32>
    %28 = arith.cmpi slt, %23, %27 : vector<8x8xi32>
    %29 = arith.andi %26, %28 : vector<8x8xi1>
    %30 = math.exp %19 : vector<8x8xf32>
    %cst_17 = arith.constant 0.000000e+00 : f32
    %31 = vector.broadcast %cst_17 : f32 to vector<8x8xf32>
    %32 = arith.select %29, %30, %31 : vector<8x8xi1>, vector<8x8xf32>
    %cst_18 = arith.constant dense<0.000000e+00> : vector<8xf32>
    %33 = vector.multi_reduction <add>, %32, %cst_18 [1] : vector<8x8xf32> to vector<8xf32>
    %34 = vector.shape_cast %33 : vector<8xf32> to vector<8x1xf32>
    %cst_19 = arith.constant 0.000000e+00 : f32
    %35 = vector.broadcast %cst_19 : f32 to vector<8x1xf32>
    %36 = arith.cmpf oeq, %34, %35 : vector<8x1xf32>
    %37 = arith.extui %36 : vector<8x1xi1> to vector<8x1xi32>
    %38 = arith.sitofp %37 : vector<8x1xi32> to vector<8x1xf32>
    %39 = arith.addf %34, %38 : vector<8x1xf32>
    %40 = vector.broadcast %39 : vector<8x1xf32> to vector<8x8xf32>
    %41 = arith.divf %32, %40 : vector<8x8xf32>
    %42 = vector.shape_cast %41 : vector<8x8xf32> to vector<8x8x1xf32>
    %43 = vector.broadcast %42 : vector<8x8x1xf32> to vector<8x8x128xf32>
    %44 = arith.mulf %43, %0 : vector<8x8x128xf32>
    %cst_20 = arith.constant dense<0.000000e+00> : vector<8x128xf32>
    %45 = vector.multi_reduction <add>, %44, %cst_20 [1] : vector<8x8x128xf32> to vector<8x128xf32>
    %c0_21 = arith.constant 0 : index
    %c0_22 = arith.constant 0 : index
    %46 = vector.load %arg8[%c0_21, %c0_22] : memref<8x128xf32, #tpu.memory_space<vmem>>, vector<8x128xf32>
    tpu.vector_store %arg8[%c0_21, %c0_22], %45 {strides = array<i32>} : memref<8x128xf32, #tpu.memory_space<vmem>>, vector<8x128xf32>,
    return
  }
  func.func @transform_0(%arg0: i32) -> (i32, i32, i32) {
    %c0_i32 = arith.constant 0 : i32
    %c0_i32_0 = arith.constant 0 : i32
    %c0_i32_1 = arith.constant 0 : i32
    return %arg0, %c0_i32, %c0_i32_0 : i32, i32, i32
  }
  func.func @transform_1(%arg0: i32) -> (i32, i32) {
    %c0_i32 = arith.constant 0 : i32
    %c0_i32_0 = arith.constant 0 : i32
    return %arg0, %c0_i32 : i32, i32
  }
  func.func @transform_2(%arg0: i32) -> (i32, i32) {
    %c0_i32 = arith.constant 0 : i32
    %c0_i32_0 = arith.constant 0 : i32
    return %arg0, %c0_i32 : i32, i32
  }
  func.func @transform_3(%arg0: i32) -> (i32, i32) {
    %c0_i32 = arith.constant 0 : i32
    %c0_i32_0 = arith.constant 0 : i32
    %c0_i32_1 = arith.constant 0 : i32
    return %c0_i32, %c0_i32_0 : i32, i32
  }
  func.func @transform_4(%arg0: i32) -> (i32, i32) {
    %c0_i32 = arith.constant 0 : i32
    %c0_i32_0 = arith.constant 0 : i32
    %c0_i32_1 = arith.constant 0 : i32
    return %c0_i32, %c0_i32_0 : i32, i32
  }
  func.func @transform_5(%arg0: i32) -> (i32, i32) {
    %c0_i32 = arith.constant 0 : i32
    %c0_i32_0 = arith.constant 0 : i32
    %c0_i32_1 = arith.constant 0 : i32
    return %c0_i32, %c0_i32_0 : i32, i32
  }
  func.func @transform_6(%arg0: i32) -> (i32, i32) {
    %c0_i32 = arith.constant 0 : i32
    %c0_i32_0 = arith.constant 0 : i32
    %c0_i32_1 = arith.constant 0 : i32
    return %c0_i32, %c0_i32_0 : i32, i32
  }
  func.func @transform_7(%arg0: i32) -> (i32, i32) {
    %c0_i32 = arith.constant 0 : i32
    %c0_i32_0 = arith.constant 0 : i32
    return %arg0, %c0_i32 : i32, i32
  }
}

</mosaic_0001>

<bundles_post_ra>
// kernel: tpu_custom_call.1
= control target key start
LH: loop header
LB: loop body
LE: loop exit
PB: predicated region body
PF: predicated region fallthrough
CT: control target
= control target key end

     0   :  { %12 = vsyncpa [#allocation3], 0  ;;  %s1863_s0 = inlined_call_operand.hbm [shape: f32[32,8,128], index: 0, kind: input, shape index: {}]   ;;  %s1864_s1 = inlined_call_operand.vmem [shape: f32[32,32], index: 1, kind: input, shape index: {}]   ;;  %s1865_s2 = inlined_call_operand.vmem [shape: f32[32,8], index: 2, kind: input, shape index: {}]   ;;  %s1866_s3 = inlined_call_operand.hbm [shape: f32[128,128], index: 3, kind: input, shape index: {}]   ;;  %s1867_s4 = inlined_call_operand.vmem [shape: f32[1,128], index: 4, kind: input, shape index: {}]   ;;  %s1868_s5 = inlined_call_operand.hbm [shape: f32[32,128], index: 5, kind: input, shape index: {}]   ;;  %s1869_s6 = inlined_call_operand.vmem [shape: f32[1,128], index: 6, kind: input, shape index: {}]   ;;  %s1870_s7 = inlined_call_operand.hbm [shape: f32[32,128], index: 7, kind: output, shape index: {}]  }
   0x1   :  { %14 = vsyncpa [#allocation3 + $0x1], 0 }
   0x2   :  { %15 = vsyncpa [#allocation6], 0 }
   0x3   :  { %16 = vsyncpa [#allocation4], 0 }
   0x4   :  { %18 = vsyncpa [#allocation4 + $0x1], 0  ;;  %s1524_s24 = smov 0   ;;  %s1526_s25 = smov 0  }
   0x5   :  { %s1528_s26 = smov 0   ;;  %s1530_s27 = smov 0  }
   0x6 LB: > { %s1545_s28 = sadd.s32 4294967295, %s1472_s27   ;;  %s1062_s29 = sadd.s32 4294967294, %s1472_s27   ;;  %s1472_s27 = sphi %s1530_s27, %s1891_s27   ;;  %s1468_s26 = sphi %s1528_s26, %s1890_s26   ;;  %s1464_s25 = sphi %s1526_s25, %s1889_s25   ;;  %s1460_s24 = sphi %s1524_s24, %s1888_s24  }
   0x7   : > { %p44_p0 = scmp.ne.s32.totalorder %s1464_s25, %s1460_s24  ;;  %p1871_p1 = scmp.eq.s32.totalorder %s1545_s28, 0 }
   0x8   : > { %p210_p3 = scmp.eq.s32.totalorder %s1062_s29, 3  ;;  %p1063_p5 = scmp.ge.s32.totalorder %s1472_s27, 1 }
   0x9   : > { %p1554_p4 = por %p1871_p1, %p44_p0  ;;  %p217_p7 = scmp.lt.s32.totalorder %s1472_s27, 5 }
   0xa   : > { %p1559_p6 = por %p210_p3, %p44_p0  ;;  %s1474_s10 = smov [#allocation5]  }
   0xb   : > { %s1875_s30 = scalar_select %p1554_p4, 1, 0 }
   0xc   : > { %s1876_s8 = scalar_select %p1559_p6, 1, 0 }
   0xd   : > { %p1564_p8 = pnand %p1063_p5, %p217_p7  ;;  %s229_s11 = sshll.u32 %s1474_s10, 4  ;;  %s230_s11 = int_to_ptr.vmem [resolvable:$true] %s229_s11 }
   0xe   : > { %s1475_s13 = smov [#allocation7]   ;;  %s1316_s17 = scalar_lea.hbm %s1866_s3, 2048 }
   0xf   : > { %s1877_s9 = scalar_select %p1564_p8, 1, 0 }
  0x10   : > { %p1221_p9 = pneg %p1564_p8  ;;  %s245_s14 = sshll.u32 %s1475_s13, 4  ;;  %s1576_s14 = int_to_ptr.vmem [resolvable:$true] %s245_s14 }
  0x11   : > { %p1317_p11 = scmp.ne.s32.totalorder %s1866_s3, %s1316_s17  ;;  %p1323_p3 = scmp.lt.u32.totalorder %s1316_s17, %s1866_s3 }
  0x12   : > { %p1572_p10 = pnand %p1221_p9, %p1871_p1 }
  0x14   : > { %p1318_p12 = pneg %p1572_p10 }
  0x16   : > { %p1319_p13 = pnand %p1318_p12, %p1317_p11 }
  0x18   : > { %p1320_p0 = pneg %p1319_p13 }
  0x1a   : > { %p1325_p5 = pnand %p1323_p3, %p1320_p0 }
  0x1c   : > { %1328 = shalt.err (!%p1325_p5)
}
  0x1d   : > { %s1329_s22 = scalar_lea.vmem %s230_s11, 2048  ;;  %p1337_p2 = scmp.lt.s32.totalorder %s230_s11, %s230_s11 }
  0x1e   : > { %p1330_p7 = scmp.ne.s32.totalorder %s230_s11, %s1329_s22  ;;  %p1338_p6 = scmp.lt.s32.totalorder %s1329_s22, %s1329_s22 }
  0x20   : > { %p1332_p9 = pnand %p1330_p7, %p1318_p12  ;;  %p1339_p4 = por %p1338_p6, %p1337_p2 }
  0x22   : > { %p1333_p1 = pneg %p1332_p9 }
  0x24   : > { %p1340_p8 = pnand %p1339_p4, %p1333_p1 }
  0x26   : > { %1343 = shalt.err (!%p1340_p8)
}
  0x27   : > { %s1874_s23 = smov 128   ;;  %s1477_s29 = smov 8  }
  0x28   : > { %1224 = dma.hbm_to_vmem [thread:$0]  (!%p1572_p10), %s1866_s3, 2048, %s230_s11, [#allocation6], %s1874_s23, %s1874_s23, %s1477_s29  }
  0x29   : > { %s1344_s17 = scalar_lea.hbm %s1868_s5, 512 }
  0x2a   : > { %p1345_p1 = scmp.ne.s32.totalorder %s1868_s5, %s1344_s17  ;;  %p1351_p6 = scmp.lt.u32.totalorder %s1344_s17, %s1868_s5 }
  0x2c   : > { %p1347_p2 = pnand %p1345_p1, %p1318_p12 }
  0x2e   : > { %p1348_p4 = pneg %p1347_p2 }
  0x30   : > { %p1353_p8 = pnand %p1351_p6, %p1348_p4 }
  0x32   : > { %1356 = shalt.err (!%p1353_p8)
}
  0x33   : > { %s1357_s11 = scalar_lea.vmem %s1576_s14, 512  ;;  %p1365_p3 = scmp.lt.s32.totalorder %s1576_s14, %s1576_s14 }
  0x34   : > { %p1358_p11 = scmp.ne.s32.totalorder %s1576_s14, %s1357_s11  ;;  %p1366_p5 = scmp.lt.s32.totalorder %s1357_s11, %s1357_s11 }
  0x36   : > { %p1360_p13 = pnand %p1358_p11, %p1318_p12  ;;  %p1367_p7 = por %p1366_p5, %p1365_p3 }
  0x38   : > { %p1361_p0 = pneg %p1360_p13 }
  0x3a   : > { %p1368_p9 = pnand %p1367_p7, %p1361_p0 }
  0x3c   : > { %1371 = shalt.err (!%p1368_p9)
}
  0x3d   : > { %1227 = dma.hbm_to_vmem [thread:$0]  (!%p1572_p10), %s1868_s5, 512, %s1576_s14, [#allocation6], %s1874_s23, %s1874_s23, %s1477_s29  }
  0x3e   : > { %s1632_s12 = sadd.s32 1, %s1472_s27   ;;  %s31_s13 = sadd.s32 1, %s1468_s26 }
  0x3f   : > { %s28_s15 = ssub.s32 %s1472_s27, %s1632_s12  ;;  %p38_p12 = scmp.ne.s32.totalorder %s1468_s26, %s1464_s25 }
  0x40   : > { %p29_p1 = scmp.eq.s32.totalorder %s28_s15, 0  ;;  %p39_p2 = scmp.eq.s32.totalorder %s1472_s27, 0 }
  0x41   : > { %p1879_p4 = scmp.eq.s32.totalorder %s1545_s28, 3  ;;  %p1238_p8 = scmp.lt.s32.totalorder %s1472_s27, 4 }
  0x42   : > { %s1648_s17 = scalar_select %p29_p1, %s1468_s26, %s31_s13  }
  0x43   : > { %p1642_p6 = por %p1879_p4, %p38_p12  ;;  %p40_p11 = por %p39_p2, %p38_p12 }
  0x44   : > { %s262_s18 = sand.u32 1, %s1468_s26   ;;  %s1086_s14 = sshll.u32 %s1472_s27, 10 }
  0x45   : > { %s1067_s19 = sshll.u32 %s262_s18, 6  ;;  %s1655_s11 = scalar_lea.hbm %s1863_s0, %s1086_s14 }
  0x46   : > { %s266_s22 = scalar_lea.vmem [#allocation2], %s1067_s19  ;;  %p1659_p10 = pnand %p1238_p8, %p40_p11 }
  0x47   : > { %s273_s10 = sshll.u32 %s266_s22, 4  ;;  %s1663_s15 = scalar_lea.sflag [#allocation3], %s262_s18  ;;  %s1657_s10 = int_to_ptr.vmem [resolvable:$true] %s273_s10 }
  0x48   : > { %s1372_s23 = scalar_lea.hbm %s1655_s11, 1024  ;;  %p1374_p0 = pneg %p1659_p10 }
  0x49   : > { %p1373_p13 = scmp.ne.s32.totalorder %s1655_s11, %s1372_s23  ;;  %s1377_s20 = scalar_lea.hbm %s1863_s0, 4096 }
  0x4a   : > { %p1378_p7 = scmp.lt.u32.totalorder %s1655_s11, %s1863_s0  ;;  %p1379_p9 = scmp.lt.u32.totalorder %s1377_s20, %s1372_s23 }
  0x4b   : > { %p1375_p3 = pnand %p1374_p0, %p1373_p13  ;;  %p1381_p1 = scmp.lt.u32.totalorder %s1372_s23, %s1655_s11 }
  0x4c   : > { %p1380_p12 = por %p1379_p9, %p1378_p7 }
  0x4d   : > { %p1376_p5 = pneg %p1375_p3 }
  0x4e   : > { %p1382_p2 = por %p1381_p1, %p1380_p12 }
  0x50   : > { %p1383_p4 = pnand %p1382_p2, %p1376_p5 }
  0x52   : > { %1386 = shalt.err (!%p1383_p4)
}
  0x53   : > { %s1387_s18 = scalar_lea.vmem %s1657_s10, 1024  ;;  %s1478_s19 = smov [#allocation2]  }
  0x54   : > { %p1388_p8 = scmp.ne.s32.totalorder %s1657_s10, %s1387_s18  ;;  %s1392_s14 = sshll.u32 %s1478_s19, 4  ;;  %s1393_s14 = int_to_ptr.vmem [resolvable:$false] %s1392_s14 }
  0x55   : > { %s1394_s21 = scalar_lea.vmem %s1393_s14, 2048  ;;  %p1395_p3 = scmp.lt.s32.totalorder %s1657_s10, %s1393_s14 }
  0x56   : > { %p1390_p11 = pnand %p1388_p8, %p1374_p0  ;;  %p1396_p7 = scmp.lt.s32.totalorder %s1394_s21, %s1387_s18 }
  0x58   : > { %p1391_p13 = pneg %p1390_p11  ;;  %p1397_p9 = por %p1396_p7, %p1395_p3 }
  0x5a   : > { %p1398_p12 = pnand %p1397_p9, %p1391_p13 }
  0x5c   : > { %1401 = shalt.err (!%p1398_p12)
}
  0x5d   : > { %s1882_s23 = smov 128   ;;  %p1883_p0 = scmp.ne.s32.totalorder %s1877_s9, 0 }
  0x5e   : > { %1231 = dma.hbm_to_vmem [thread:$0]  (!%p1659_p10), %s1655_s11, 1024, %s1657_s10, %s1663_s15, %s1882_s23, %s1882_s23, %s1477_s29  }
  0x5f   : > { %299 = sbr.rel (%p1883_p0) target bundleno = 868 (0x364), region = 48  ;;  %s1697_s20 = sand.u32 (!%p1883_p0), 1, %s1464_s25  }
  0x60   : > { %s1071_s22 = sshll.u32 (!%p1883_p0), %s1697_s20, 6  ;;  %s302_s18 = scalar_lea.sflag (!%p1883_p0), [#allocation3], %s1697_s20 }
  0x61   : > { %s1701_s19 = scalar_lea.vmem (!%p1883_p0), [#allocation2], %s1071_s22  ;;  %p1884_p5 = scmp.ne.s32.totalorder (!%p1883_p0), %s1875_s30, 0 }
  0x66   : > { %1447 = dma.done.wait (%p1884_p5), %s302_s18, 1024  }
  0x67   : > { %1449 = vsyncadd (%p1884_p5), %s302_s18, 4294966272  ;;  %p1885_p10 = scmp.eq.s32.totalorder %s1545_s28, 0 }
  0x69   : > { %1451 = dma.done.wait (%p1885_p10), [#allocation6], 2560   ;;  %p1886_p1 = pmov %p1885_p10 }
  0x6a   : > { %v1479_v0 = vmov 0.0|0.0   ;;  %vm1480_vm0 = vmmov 0   ;;  %v1481_v1 = vmov 0.0   ;;  %p353_p2 = scmp.lt.s32.totalorder %s1545_s28, 3  ;;  %v369_v2 = vld [vmem:[#allocation5] sm:$0xff]  ;;  %v370_v3 = vld [vmem:[#allocation5 + $0x8] sm:$0xff]  ;;  %v581_v43 = vlaneseq }
  0x6b   : > { %1453 = vsyncadd (%p1886_p1), [#allocation6], 4294964736  ;;  %1203 = vmatprep.subr.bf16.mxu1 %v1479_v0  ;;  %1168 = vmatprep.mubr.msk.f32.mxu1 %vm1480_vm0, %v1481_v1  ;;  %v371_v4 = vld [vmem:[#allocation5 + $0x10] sm:$0xff]  ;;  %v1171_v5 = vpack.c.bf16 %v370_v3, %v369_v2  ;;  %v372_v6 = vld [vmem:[#allocation5 + $0x18] sm:$0xff]  ;;  %vm502_vm1 = vcmask 261120   ;;  %s1080_s23 = sshll.u32 %s1545_s28, 3 }
  0x6c   : > { %s1714_s30 = scalar_select %p353_p2, %s1545_s28, 3  ;;  %v1175_v7 = vpack.c.bf16 %v372_v6, %v371_v4  ;;  %v373_v8 = vld [vmem:[#allocation5 + $0x20] sm:$0xff]  ;;  %v374_v9 = vld [vmem:[#allocation5 + $0x28] sm:$0xff]  ;;  %v500_v13 = vld [vmem:[#allocation7 + $0x10] sm:$0xff]  ;;  %v1482_v41 = vmov 1966171168  }
  0x6d   : > { %1172 = vmatprep.subr.bf16.mxu0 %v1171_v5  ;;  %v498_v10 = vld [vmem:[#allocation7] sm:$0xff]  ;;  %v499_v11 = vld [vmem:[#allocation7 + $0x8] sm:$0xff]  ;;  %v1179_v14 = vpack.c.bf16 %v374_v9, %v373_v8  ;;  %v501_v15 = vld [vmem:[#allocation7 + $0x18] sm:$0xff]  ;;  %v579_v42 = vunpack.c.l.s4 %v1482_v41  ;;  %v1755_v46 = vshrl.u32 %v581_v43, 7  ;;  %vm780_vm2 = vcmask 1041409   ;;  %s1483_s21 = smov [#allocation8]  }
  0x6e   : > { %1174 = vmatpush3.bf16.msra.mxu0 %v1171_v5  ;;  %v1204_v12 = vpack.c.bf16 %v499_v11, %v498_v10  ;;  %s1075_s9 = sshll.u32 %s1714_s30, 3  ;;  %v375_v16 = vld [vmem:[#allocation5 + $0x30] sm:$0xff]  ;;  %v376_v17 = vld [vmem:[#allocation5 + $0x38] sm:$0xff]  ;;  %v1207_v18 = vpack.c.bf16 %v501_v15, %v500_v13  ;;  %v1723_v19 = vld [vmem:[%s1701_s19] sm:$0xff]  ;;  %vm782_vm3 = vcmask 1042434   ;;  %vm784_vm4 = vcmask 1043459  }
  0x6f   : > { %1176 = vmatprep.subr.bf16.mxu0 %v1175_v7  ;;  %s356_s10 = scalar_lea.vmem %s1864_s1, %s1075_s9  ;;  %1148 = vmatprep.mubr.f32.mxu0 %v1723_v19  ;;  %v1183_v20 = vpack.c.bf16 %v376_v17, %v375_v16  ;;  %v377_v21 = vld [vmem:[#allocation5 + $0x40] sm:$0xff]  ;;  %v378_v22 = vld [vmem:[#allocation5 + $0x48] sm:$0xff]  ;;  %v379_v25 = vld [vmem:[#allocation5 + $0x50] sm:$0xff]  ;;  %v580_v45 = vunpack.c.0.s8 %v579_v42  ;;  %v1759_v53 = vsub.s32 0, %v1755_v46  ;;  %vm786_vm5 = vcmask 1044484   ;;  %s1074_s30 = sshll.u32 %s1697_s20, 3 }
  0x70   : > { %1205 = vmatpush3.bf16.msra.mxu1 %v1204_v12  ;;  %v497_v23 = vld [vmem:[%s356_s10] sm:$0xff]  ;;  %v1187_v24 = vpack.c.bf16 %v378_v22, %v377_v21  ;;  %v380_v26 = vld [vmem:[#allocation5 + $0x58] sm:$0xff]  ;;  %v382_v29 = vld [vmem:[#allocation5 + $0x68] sm:$0xff]  ;;  %vm788_vm6 = vcmask 1045509   ;;  %vm790_vm9 = vcmask 1046534   ;;  %vm792_vm10 = vcmask 1047559  }
  0x71   : > { %1206 = vmatprep.subr.bf16.mxu1 %v1479_v0  ;;  %v1191_v27 = vpack.c.bf16 %v380_v26, %v379_v25  ;;  %v381_v28 = vld [vmem:[#allocation5 + $0x60] sm:$0xff]  ;;  %v383_v31 = vld [vmem:[#allocation5 + $0x70] sm:$0xff]  ;;  %v384_v32 = vld [vmem:[#allocation5 + $0x78] sm:$0xff]  ;;  %v583_v48 = vsub.s32 %v580_v45, %v1755_v46  ;;  %vm796_vm12 = vcmask 64512   ;;  %s351_s29 = scalar_lea.vmem [#allocation8], %s1074_s30 }
  0x72   : > { %1178 = vmatpush3.bf16.msra.mxu0 %v1175_v7  ;;  %v1195_v30 = vpack.c.bf16 %v382_v29, %v381_v28  ;;  %v1199_v33 = vpack.c.bf16 %v384_v32, %v383_v31  ;;  %v1727_v34 = vld [vmem:[%s1701_s19 + $0x8] sm:$0xff]  ;;  %v1730_v35 = vld [vmem:[%s1701_s19 + $0x10] sm:$0xff]  ;;  %v1735_v36 = vld [vmem:[%s1701_s19 + $0x18] sm:$0xff]  ;;  %s949_s11 = sshll.u32 %s351_s29, 4  ;;  %s1821_s11 = int_to_ptr.vmem [resolvable:$true] %s949_s11 }
  0x73   : > { %1180 = vmatprep.subr.bf16.mxu0 %v1179_v14  ;;  %v1738_v37 = vld [vmem:[%s1701_s19 + $0x20] sm:$0xff]  ;;  %v1743_v38 = vld [vmem:[%s1701_s19 + $0x28] sm:$0xff]  ;;  %v1746_v39 = vld [vmem:[%s1701_s19 + $0x30] sm:$0xff]  ;;  %s1402_s14 = scalar_lea.vmem %s1821_s11, 128 }
  0x74   : > { %1208 = vmatpush3.bf16.msra.mxu1 %v1207_v18  ;;  %v1751_v40 = vld [vmem:[%s1701_s19 + $0x38] sm:$0xff]  ;;  %v1077_v56 = vld [vmem:[%s1867_s4] ss:$0 sm:$0xff]  ;;  %s360_s19 = scalar_lea.vmem %s1865_s2, %s1075_s9  ;;  %s1083_s9 = sshll.u32 %s1545_s28, 7 }
  0x75   : > { %s1819_s15 = scalar_lea.hbm %s1870_s7, %s1083_s9  ;;  %s936_s28 = scalar_lea.sflag [#allocation4], %s1697_s20 }
  0x76   : > { %1182 = vmatpush3.bf16.msra.mxu0 %v1179_v14  ;;  %p1403_p4 = scmp.ne.s32.totalorder %s1821_s11, %s1402_s14 }
  0x77   : > { %1184 = vmatprep.subr.bf16.mxu0 %v1183_v20  ;;  %1169 = vmatmul.mubr.msk.f32.vlgmr.msra.gmra.mrb[0].mxu1 %vm502_vm1, %v497_v23 }
  0x78   : > { %p1404_p8 = pnand %p1403_p4, %p1642_p6 }
  0x7a   : > { %1186 = vmatpush3.bf16.msra.mxu0 %v1183_v20  ;;  %p1405_p11 = pneg %p1404_p8 }
  0x7b   : > { %1188 = vmatprep.subr.bf16.mxu0 %v1187_v24 }
  0x7e   : > { %1190 = vmatpush3.bf16.msra.mxu0 %v1187_v24 }
  0x7f   : > { %1192 = vmatprep.subr.bf16.mxu0 %v1191_v27 }
  0x82   : > { %1194 = vmatpush3.bf16.msra.mxu0 %v1191_v27 }
  0x83   : > { %1196 = vmatprep.subr.bf16.mxu0 %v1195_v30 }
  0x86   : > { %1198 = vmatpush3.bf16.msra.mxu0 %v1195_v30  ;;  %v1079_v30 = vld [vmem:[%s1869_s6] ss:$0 sm:$0xff] }
  0x87   : > { %1200 = vmatprep.subr.bf16.mxu0 %v1199_v33 }
  0x8a   : > { %1202 = vmatpush3.bf16.msra.mxu0 %v1199_v33 }
  0x8d   : > { %1149 = vmatmul.mubr.f32.vlgmr.msra.gmra.mrb[0].mxu0 %v1727_v34 }
  0x8e   : > { %1151 = vmatprep.mubr.f32.mxu0 %v1730_v35 }
  0x91   : > { %1152 = vmatmul.mubr.f32.gmra.mrb[2].mxu0 %v1735_v36 }
  0x92   : > { %1154 = vmatprep.mubr.f32.mxu0 %v1738_v37 }
  0x95   : > { %1155 = vmatmul.mubr.f32.gmra.mrb[4].mxu0 %v1743_v38 }
  0x96   : > { %1157 = vmatprep.mubr.f32.mxu0 %v1746_v39 }
  0x99   : > { %1158 = vmatmul.mubr.f32.gmra.mrb[6].mxu0 %v1751_v40 }
 0x14a   : > { %v572_v44 = vpop.f32.mrb[0].mxu1 }
 0x14b   : > { %v1170_v47 = vpop.f32.mrb[1].mxu1  ;;  %v584_v49 = vrot.slane %v572_v44, %v583_v48  ;;  %v577_v51 = vcombine.high %v572_v44, %v572_v44 }
 0x14d   : > { %v592_v50 = vcombine.high %v584_v49, %v584_v49  ;;  %v600_v54 = vrot.slane %v584_v49, %v583_v48  ;;  %v591_v55 = vrot.slane %v577_v51, %v583_v48 }
 0x14f   : > { %v614_v52 = vrot.slane %v592_v50, %v583_v48  ;;  %v629_v60 = vrot.slane %v600_v54, %v1759_v53  ;;  %v593_v61 = vcombine.high %v591_v55, %v591_v55  ;;  %v622_v0 = vcombine.high %v600_v54, %v600_v54 }
 0x150   : > { %v607_v10 = vrot.slane %v591_v55, %v583_v48 }
 0x151   : > { %v633_v57 = vrot.slane %v614_v52, %v1759_v53  ;;  %v624_v58 = vcombine.high %v614_v52, %v614_v52  ;;  %v621_v9 = vrot.slane %v593_v61, %v583_v48  ;;  %v637_v12 = vrot.slane %v622_v0, %v1759_v53 }
 0x152   : > { %v645_v22 = vrot.slane %v607_v10, %v1759_v53  ;;  %v623_v23 = vcombine.high %v607_v10, %v607_v10 }
 0x153   : > { %v641_v4 = vrot.slane %v624_v58, %v1759_v53  ;;  %v649_v17 = vrot.slane %v621_v9, %v1759_v53  ;;  %v625_v20 = vcombine.high %v621_v9, %v621_v9  ;;  %v747_v9 = vand.u32 127, %v581_v43 }
 0x154   : > { %v653_v32 = vrot.slane %v623_v23, %v1759_v53 }
 0x155   : > { %v657_v28 = vrot.slane %v625_v20, %v1759_v53  ;;  %v716_v20 = vstv %s1080_s23  ;;  %s1406_s23 = sshll.u32 %s1483_s21, 4  ;;  %s1407_s23 = int_to_ptr.vmem [resolvable:$false] %s1406_s23 }
 0x156   : > { %s1408_s22 = scalar_lea.vmem %s1407_s23, 256  ;;  %p1409_p13 = scmp.lt.s32.totalorder %s1821_s11, %s1407_s23 }
 0x157   : > { %p1410_p3 = scmp.lt.s32.totalorder %s1408_s22, %s1402_s14 }
 0x159   : > { %p1411_p7 = por %p1410_p3, %p1409_p13 }
 0x15b   : > { %p1412_p9 = pnand %p1411_p7, %p1405_p11 }
 0x160   : > { %v1150_v59 = vpop.f32.mrb[0].mxu0 }
 0x161   : > { %v464_v62 = vadd.f32 %v1150_v59, %v1077_v56  ;;  %v458_v63 = vpop.f32.mrb[1].mxu0 }
 0x162   : > { %v459_v2 = vadd.f32 %v1077_v56, %v458_v63 }
 0x163   : > { %v667_v3 = vadd.f32 %v633_v57, %v464_v62 }
 0x164   : > { %v666_v5 = vadd.f32 %v629_v60, %v459_v2  ;;  %v1153_v6 = vpop.f32.mrb[2].mxu0 }
 0x165   : > { %1282 = vtanh.f32 %v667_v3  ;;  %v474_v7 = vadd.f32 %v1153_v6, %v1077_v56  ;;  %v468_v8 = vpop.f32.mrb[3].mxu0 }
 0x166   : > { %v469_v11 = vadd.f32 %v1077_v56, %v468_v8  ;;  %1284 = vtanh.f32 %v666_v5 }
 0x167   : > { %v669_v13 = vadd.f32 %v641_v4, %v474_v7 }
 0x168   : > { %v668_v14 = vadd.f32 %v637_v12, %v469_v11  ;;  %v1156_v15 = vpop.f32.mrb[4].mxu0 }
 0x169   : > { %1286 = vtanh.f32 %v669_v13  ;;  %v484_v16 = vadd.f32 %v1156_v15, %v1077_v56  ;;  %v478_v18 = vpop.f32.mrb[5].mxu0  ;;  %v750_v15 = vsub.s32 %v747_v9, %v1755_v46 }
 0x16a   : > { %v479_v21 = vadd.f32 %v1077_v56, %v478_v18  ;;  %1288 = vtanh.f32 %v668_v14 }
 0x16b   : > { %v671_v24 = vadd.f32 %v649_v17, %v484_v16 }
 0x16c   : > { %v670_v25 = vadd.f32 %v645_v22, %v479_v21  ;;  %v1159_v26 = vpop.f32.mrb[6].mxu0 }
 0x16d   : > { %v494_v27 = vadd.f32 %v1159_v26, %v1077_v56  ;;  %v488_v29 = vpop.f32.mrb[7].mxu0 }
 0x16e   : > { %1290 = vtanh.f32 %v670_v25  ;;  %v489_v31 = vadd.f32 %v1077_v56, %v488_v29  ;;  %v717_v25 = vadd.s32 %v716_v20, %v1755_v46  ;;  %v718_v29 = vld [vmem:[%s360_s19] sm:$0xff] }
 0x16f   : > { %v1283_v33 = vpop.eup %1282  ;;  %1292 = vtanh.f32 %v671_v24  ;;  %v673_v41 = vadd.f32 %v657_v28, %v494_v27  ;;  %vm719_vm7 = vcmp.gt.f32.partialorder %v718_v29, 0.0 }
 0x170   : > { %v672_v42 = vadd.f32 %v653_v32, %v489_v31  ;;  %v690_v44 = vmul.f32 %v1283_v33, %v1079_v30  ;;  %v1285_v45 = vpop.eup %1284  ;;  %vm720_vm8 = vcmp.lt.s32.totalorder %v717_v25, 32 }
 0x171   : > { %v689_v49 = vmul.f32 %v1285_v45, %v1079_v30  ;;  %vm721_vm11 = vmand %vm719_vm7, %vm720_vm8 }
 0x172   : > { %1294 = vtanh.f32 %v672_v42  ;;  %699 = vadd.xlane.f32.xlu0 %v690_v44 }
 0x173   : > { %v1287_v47 = vpop.eup %1286  ;;  %1296 = vtanh.f32 %v673_v41 }
 0x174   : > { %v692_v48 = vmul.f32 %v1287_v47, %v1079_v30  ;;  %v1289_v50 = vpop.eup %1288 }
 0x175   : > { %v691_v52 = vmul.f32 %v1289_v50, %v1079_v30 }
 0x176   : > { %703 = vadd.xlane.f32.xlu1 %v692_v48  ;;  %697 = vadd.xlane.f32.xlu0 %v689_v49 }
 0x178   : > { %v1291_v51 = vpop.eup %1290 }
 0x179   : > { %v1293_v54 = vpop.eup %1292  ;;  %v693_v55 = vmul.f32 %v1291_v51, %v1079_v30 }
 0x17a   : > { %701 = vadd.xlane.f32.xlu1 %v691_v52  ;;  %v694_v57 = vmul.f32 %v1293_v54, %v1079_v30 }
 0x17b   : > { %705 = vadd.xlane.f32.xlu0 %v693_v55 }
 0x17c   : > { %v1295_v56 = vpop.eup %1294 }
 0x17d   : > { %v1297_v58 = vpop.eup %1296  ;;  %v695_v59 = vmul.f32 %v1295_v56, %v1079_v30 }
 0x17e   : > { %707 = vadd.xlane.f32.xlu1 %v694_v57  ;;  %v696_v60 = vmul.f32 %v1297_v58, %v1079_v30  ;;  %v815_v57 = vsub.s32 1, %v1755_v46 }
 0x17f   : > { %709 = vadd.xlane.f32.xlu0 %v695_v59 }
 0x182   : > { %711 = vadd.xlane.f32.xlu1 %v696_v60 }
 0x1ff   : > { %v700_v61 = vpop.xlane.xlu0 %699 }
 0x200   : > { %v724_v62 = vmul.f32 1.442695, %v700_v61 }
 0x202   : > { %1298 = vpow2.f32 %v724_v62  ;;  %v843_v62 = vsub.s32 5, %v1755_v46 }
 0x203   : > { %v704_v63 = vpop.xlane.xlu1 %703  ;;  %v698_v0 = vpop.xlane.xlu0 %697 }
 0x204   : > { %v722_v2 = vmul.f32 1.442695, %v698_v0  ;;  %v728_v3 = vmul.f32 1.442695, %v704_v63  ;;  %v822_v63 = vsub.s32 2, %v1755_v46 }
 0x206   : > { %1300 = vpow2.f32 %v722_v2 }
 0x207   : > { %v702_v4 = vpop.xlane.xlu1 %701  ;;  %1302 = vpow2.f32 %v728_v3  ;;  %v857_v3 = vsub.s32 7, %v1755_v46 }
 0x208   : > { %v726_v5 = vmul.f32 1.442695, %v702_v4  ;;  %v706_v6 = vpop.xlane.xlu0 %705 }
 0x209   : > { %v730_v7 = vmul.f32 1.442695, %v706_v6  ;;  %v836_v6 = vsub.s32 4, %v1755_v46 }
 0x20a   : > { %1304 = vpow2.f32 %v726_v5 }
 0x20b   : > { %1306 = vpow2.f32 %v730_v7  ;;  %v708_v8 = vpop.xlane.xlu1 %707  ;;  %v850_v7 = vsub.s32 6, %v1755_v46 }
 0x20c   : > { %v732_v10 = vmul.f32 1.442695, %v708_v8  ;;  %v710_v11 = vpop.xlane.xlu0 %709  ;;  %v1299_v14 = vpop.eup %1298 }
 0x20d   : > { %v734_v12 = vmul.f32 1.442695, %v710_v11  ;;  %v755_v43 = vrot.slane %v1299_v14, %v750_v15 }
 0x20e   : > { %1308 = vpow2.f32 %v732_v10 }
 0x20f   : > { %1310 = vpow2.f32 %v734_v12  ;;  %v712_v13 = vpop.xlane.xlu1 %711 }
 0x210   : > { %v736_v16 = vmul.f32 1.442695, %v712_v13  ;;  %v1301_v17 = vpop.eup %1300 }
 0x211   : > { %v751_v18 = vrot.slane %v1301_v17, %v750_v15  ;;  %v1303_v21 = vpop.eup %1302 }
 0x212   : > { %1312 = vpow2.f32 %v736_v16  ;;  %v763_v26 = vrot.slane %v1303_v21, %v750_v15 }
 0x213   : > { %v781_v28 = vsel %vm780_vm2, %v755_v43, %v751_v18 }
 0x214   : > { %v1305_v22 = vpop.eup %1304 }
 0x215   : > { %v1307_v23 = vpop.eup %1306  ;;  %v759_v24 = vrot.slane %v1305_v22, %v750_v15 }
 0x216   : > { %v767_v27 = vrot.slane %v1307_v23, %v750_v15 }
 0x217   : > { %v783_v30 = vsel %vm782_vm3, %v759_v24, %v781_v28 }
 0x218   : > { %v1309_v31 = vpop.eup %1308  ;;  %v785_v32 = vsel %vm784_vm4, %v763_v26, %v783_v30 }
 0x219   : > { %v1311_v33 = vpop.eup %1310  ;;  %v771_v41 = vrot.slane %v1309_v31, %v750_v15  ;;  %v787_v42 = vsel %vm786_vm5, %v767_v27, %v785_v32 }
 0x21a   : > { %v775_v44 = vrot.slane %v1311_v33, %v750_v15 }
 0x21b   : > { %v789_v45 = vsel %vm788_vm6, %v771_v41, %v787_v42 }
 0x21c   : > { %v1313_v47 = vpop.eup %1312  ;;  %v791_v49 = vsel %vm790_vm9, %v775_v44, %v789_v45 }
 0x21d   : > { %v779_v48 = vrot.slane %v1313_v47, %v750_v15 }
 0x21f   : > { %v793_v50 = vsel %vm792_vm10, %v779_v48, %v791_v49 }
 0x220   : > { %v795_v51 = vsel %vm721_vm11, %v793_v50, 0.0 }
 0x221   : > { %v797_v52 = vsel %vm796_vm12, %v795_v51, 0.0 }
 0x222   : > { %798 = vadd.xlane.f32.xlu0 %v797_v52 }
 0x2af   : > { %v799_v54 = vpop.xlane.xlu0 %798 }
 0x2b0   : > { %vm800_vm13 = vcmp.eq.f32.partialorder %v799_v54, 0.0 }
 0x2b1   : > { %v1081_v55 = vsel %vm800_vm13, 1.0, %v1481_v1  ;;  %v829_v1 = vsub.s32 3, %v1755_v46 }
 0x2b2   : > { %v803_v56 = vadd.f32 %v1081_v55, %v799_v54 }
 0x2b4   : > { %1314 = vrcp.f32 %v803_v56 }
 0x2be   : > { %v1315_v58 = vpop.eup %1314 }
 0x2bf   : > { %v805_v59 = vmul.f32 %v1315_v58, %v795_v51 }
 0x2c1   : > { %v816_v60 = vrot.slane %v805_v59, %v815_v57  ;;  %v809_v61 = vrot.slane %v805_v59, %v1759_v53  ;;  %v844_v0 = vrot.slane %v805_v59, %v843_v62  ;;  %v823_v2 = vrot.slane %v805_v59, %v822_v63 }
 0x2c2   : > { %v858_v4 = vrot.slane %v805_v59, %v857_v3  ;;  %v830_v5 = vrot.slane %v805_v59, %v829_v1  ;;  %v837_v53 = vrot.slane %v805_v59, %v836_v6  ;;  %v851_v8 = vrot.slane %v805_v59, %v850_v7 }
 0x2c3   : > { %818 = vbcast.lane.b32.xlu0 %v816_v60, 256  ;;  %811 = vbcast.lane.b32.xlu1 %v809_v61, 256 }
 0x2c7   : > { %846 = vbcast.lane.b32.xlu0 %v844_v0, 256  ;;  %825 = vbcast.lane.b32.xlu1 %v823_v2, 256 }
 0x2cb   : > { %860 = vbcast.lane.b32.xlu0 %v858_v4, 256  ;;  %832 = vbcast.lane.b32.xlu1 %v830_v5, 256 }
 0x2cf   : > { %839 = vbcast.lane.b32.xlu1 %v837_v53, 256 }
 0x2d3   : > { %853 = vbcast.lane.b32.xlu1 %v851_v8, 256 }
 0x335   : > { %v819_v9 = vpop.permute.xlu0 %818  ;;  %v812_v10 = vpop.permute.xlu1 %811 }
 0x336   : > { %v863_v11 = vmul.f32 %v819_v9, %v1727_v34  ;;  %v862_v12 = vmul.f32 %v812_v10, %v1723_v19 }
 0x338   : > { %v876_v13 = vrot.slane %v863_v11, 4  ;;  %v870_v14 = vrot.slane %v862_v12, 4 }
 0x339   : > { %v847_v15 = vpop.permute.xlu0 %846  ;;  %v826_v16 = vpop.permute.xlu1 %825 }
 0x33a   : > { %v877_v17 = vadd.f32 %v876_v13, %v863_v11  ;;  %v871_v18 = vadd.f32 %v870_v14, %v862_v12  ;;  %v867_v20 = vmul.f32 %v847_v15, %v1743_v38  ;;  %v864_v21 = vmul.f32 %v826_v16, %v1730_v35 }
 0x33c   : > { %v882_v46 = vrot.slane %v864_v21, 4  ;;  %v900_v22 = vrot.slane %v867_v20, 4  ;;  %v878_v24 = vrot.slane %v877_v17, 2  ;;  %v872_v25 = vrot.slane %v871_v18, 2 }
 0x33d   : > { %v861_v43 = vpop.permute.xlu0 %860  ;;  %v833_v23 = vpop.permute.xlu1 %832 }
 0x33e   : > { %v883_v26 = vadd.f32 %v882_v46, %v864_v21  ;;  %v869_v34 = vmul.f32 %v861_v43, %v1751_v40  ;;  %v865_v19 = vmul.f32 %v833_v23, %v1735_v36  ;;  %v901_v28 = vadd.f32 %v900_v22, %v867_v20 }
 0x33f   : > { %v879_v32 = vadd.f32 %v878_v24, %v877_v17  ;;  %v873_v38 = vadd.f32 %v872_v25, %v871_v18 }
 0x340   : > { %v884_v27 = vrot.slane %v883_v26, 2  ;;  %v912_v29 = vrot.slane %v869_v34, 4  ;;  %v888_v30 = vrot.slane %v865_v19, 4  ;;  %v902_v44 = vrot.slane %v901_v28, 2 }
 0x341   : > { %v840_v31 = vpop.permute.xlu1 %839  ;;  %v880_v49 = vrot.slane %v879_v32, 1  ;;  %v874_v40 = vrot.slane %v873_v38, 1 }
 0x342   : > { %v885_v33 = vadd.f32 %v884_v27, %v883_v26  ;;  %v913_v35 = vadd.f32 %v912_v29, %v869_v34  ;;  %v889_v41 = vadd.f32 %v888_v30, %v865_v19  ;;  %v866_v42 = vmul.f32 %v840_v31, %v1738_v37 }
 0x343   : > { %v903_v56 = vadd.f32 %v902_v44, %v901_v28  ;;  %v881_v59 = vadd.f32 %v880_v49, %v879_v32  ;;  %v875_v60 = vadd.f32 %v874_v40, %v873_v38 }
 0x344   : > { %v890_v45 = vrot.slane %v889_v41, 2  ;;  %v894_v47 = vrot.slane %v866_v42, 4  ;;  %v886_v50 = vrot.slane %v885_v33, 1  ;;  %v914_v51 = vrot.slane %v913_v35, 2 }
 0x345   : > { %v854_v48 = vpop.permute.xlu1 %853  ;;  %v904_v3 = vrot.slane %v903_v56, 1  ;;  %v926_v1 = vsel %vm780_vm2, %v881_v59, %v875_v60 }
 0x346   : > { %v868_v36 = vmul.f32 %v854_v48, %v1746_v39  ;;  %v891_v52 = vadd.f32 %v890_v45, %v889_v41  ;;  %v895_v54 = vadd.f32 %v894_v47, %v866_v42  ;;  %v887_v61 = vadd.f32 %v886_v50, %v885_v33 }
 0x347   : > { %v915_v62 = vadd.f32 %v914_v51, %v913_v35  ;;  %v905_v9 = vadd.f32 %v904_v3, %v903_v56 }
 0x348   : > { %v906_v55 = vrot.slane %v868_v36, 4  ;;  %v892_v57 = vrot.slane %v891_v52, 1  ;;  %v896_v58 = vrot.slane %v895_v54, 2  ;;  %v927_v5 = vsel %vm782_vm3, %v887_v61, %v926_v1 }
 0x349   : > { %v916_v6 = vrot.slane %v915_v62, 1 }
 0x34a   : > { %v907_v37 = vadd.f32 %v906_v55, %v868_v36  ;;  %v897_v63 = vadd.f32 %v896_v58, %v895_v54  ;;  %v893_v0 = vadd.f32 %v892_v57, %v891_v52 }
 0x34b   : > { %v917_v12 = vadd.f32 %v916_v6, %v915_v62 }
 0x34c   : > { %v908_v2 = vrot.slane %v907_v37, 2  ;;  %v898_v39 = vrot.slane %v897_v63, 1  ;;  %v928_v7 = vsel %vm784_vm4, %v893_v0, %v927_v5 }
 0x34e   : > { %v909_v4 = vadd.f32 %v908_v2, %v907_v37  ;;  %v899_v53 = vadd.f32 %v898_v39, %v897_v63 }
 0x350   : > { %v910_v8 = vrot.slane %v909_v4, 1  ;;  %v929_v10 = vsel %vm786_vm5, %v899_v53, %v928_v7 }
 0x351   : > { %v930_v13 = vsel %vm788_vm6, %v905_v9, %v929_v10 }
 0x352   : > { %v911_v11 = vadd.f32 %v910_v8, %v909_v4 }
 0x354   : > { %v931_v14 = vsel %vm790_vm9, %v911_v11, %v930_v13 }
 0x355   : > { %v932_v15 = vsel %vm792_vm10, %v917_v12, %v931_v14 }
 0x356   : > { %934 = vst [vmem:[%s351_s29] sm:$0xff] %v932_v15 }
 0x357   : > { %1415 = shalt.err (!%p1412_p9)
}
 0x358   : > { %s1416_s20 = scalar_lea.hbm %s1819_s15, 128  ;;  %s1420_s30 = scalar_lea.hbm %s1870_s7, 512 }
 0x359   : > { %p1417_p12 = scmp.ne.s32.totalorder %s1819_s15, %s1416_s20  ;;  %p1421_p10 = scmp.lt.u32.totalorder %s1819_s15, %s1870_s7 }
 0x35a   : > { %p1422_p1 = scmp.lt.u32.totalorder %s1420_s30, %s1416_s20  ;;  %p1424_p4 = scmp.lt.u32.totalorder %s1416_s20, %s1819_s15 }
 0x35b   : > { %p1418_p0 = pnand %p1417_p12, %p1642_p6 }
 0x35c   : > { %p1423_p2 = por %p1422_p1, %p1421_p10 }
 0x35d   : > { %p1419_p5 = pneg %p1418_p0 }
 0x35e   : > { %p1425_p8 = por %p1424_p4, %p1423_p2 }
 0x360   : > { %p1426_p11 = pnand %p1425_p8, %p1419_p5 }
 0x362   : > { %1429 = shalt.err (!%p1426_p11)
}
 0x363   : > { %1219 = dma.vmem_to_hbm [thread:$0]  (%p1642_p6), %s1821_s11, 128, %s1819_s15, %s936_s28  }
 0x364 PF: > { %p1241_p13 = scmp.ge.s32.totalorder %s1472_s27, 2  ;;  %s961_s10 = sand.u32 1, %s1460_s24  }
 0x365   : > { %p1887_p3 = scmp.ne.s32.totalorder %s1876_s8, 0  ;;  %s962_s13 = scalar_lea.sflag [#allocation4], %s961_s10 }
 0x367   : > { %p1233_p7 = pnand %p1241_p13, %p1887_p3 }
 0x369   : > { %1455 = dma.done.wait (!%p1233_p7), %s962_s13, 128  }
 0x36a   : > { %1457 = vsyncadd (!%p1233_p7), %s962_s13, 4294967168  ;;  %p21_p9 = scmp.ge.s32.totalorder %s1632_s12, 6   ;;  %s1888_s24 = smov %s1464_s25 }
 0x36b   : > { %s1889_s25 = smov %s1468_s26  ;;  %s1890_s26 = smov %s1648_s17 }
 0x36c   : > { %s1891_s27 = smov %s1632_s12  ;;  %23 = sbr.rel (!%p21_p9) target bundleno = 6 (0x6), region = 107 }
 0x373   :  { %967 = vsyncpa [#allocation3], 1 }
 0x374   :  { %969 = vsyncpa [#allocation3 + $0x1], 1 }
 0x375   :  { %970 = vsyncpa [#allocation6], 1 }
 0x376   :  { %971 = vsyncpa [#allocation4], 1 }
 0x377   :  { %973 = vsyncpa [#allocation4 + $0x1], 1 }

</bundles_post_ra>
